<compile_context>
chip_gen: v5e
topology: v5e:2x2
jax: 0.10.0
libtpu: 0.0.40
codegen_flags: <defaults>
</compile_context>

<pallas_src>
import math

import jax
import jax.numpy as jnp
from jax.experimental import pallas as pl
from jax.experimental.pallas import tpu as pltpu

_K0 = math.sqrt(2.0 / math.pi)      # sqrt(2/pi)
_K1 = _K0 * 0.044715                # sqrt(2/pi) * 0.044715


def _round_up(v: int, m: int) -> int:
    return ((v + m - 1) // m) * m


def _gelu_tanh_kernel(x_ref, o_ref):
    x = x_ref[...]
    # Upcast to f32 inside the kernel only (no extra HBM traffic).
    xf = x.astype(jnp.float32)
    # sqrt(2/pi) * (x + 0.044715*x^3)  ==  x * (K0 + K1*x^2)   (Horner form)
    inner = xf * (_K0 + _K1 * (xf * xf))
    # 0.5*x*(1 + tanh(inner))  ==  x * (0.5 + 0.5*tanh(inner)); tanh -> EUP.
    y = xf * (0.5 + 0.5 * jnp.tanh(inner))
    o_ref[...] = y.astype(o_ref.dtype)


def gelu_activation(x: jax.Array) -> jax.Array:
    """Tanh-approx GELU: 0.5*x*(1+tanh(sqrt(2/pi)*(x+0.044715*x^3)))."""
    orig_shape = x.shape
    n = x.size
    if n == 0:
        return x

    itemsize = jnp.dtype(x.dtype).itemsize
    # Sublane packing granularity per element width (f32:8, bf16:16, i8:32).
    base_rows = {4: 8, 2: 16, 1: 32}.get(itemsize, 8)

    # --- Lane-dense 2D view ------------------------------------------------
    # Fast path: pick the largest lane width that divides the flat size; the
    # reshape is then a pure metadata op (no pad, no slice).
    lane = None
    for cand in (1024, 512, 256, 128):
        if n % cand == 0:
            lane = cand
            break

    x_flat = x.reshape(-1)
    padded_n = n
    if lane is None:
        # Ragged fallback: pad at most one lane-row worth of elements.
        lane = 512 if n >= 512 else 128
        padded_n = _round_up(n, lane)
        x_flat = jnp.pad(x_flat, (0, padded_n - n))

    rows = padded_n // lane
    x2d = x_flat.reshape(rows, lane)

    # --- Tile sizing --------------------------------------------------------
    # Target ~4 MiB per block: 2 (dbl-buf) x 2 (in+out) x 4 MiB = 16 MiB VMEM,
    # within the explicit 32 MiB scoped limit set below (legal on v5e/v6e/v7x).
    target_block_bytes = 4 * 1024 * 1024
    tile_rows_target = max(
        base_rows,
        (target_block_bytes // (lane * itemsize)) // base_rows * base_rows,
    )

    if rows <= base_rows:
        # Tiny input: one block covering the full row extent (block dim equal
        # to the full array dim is always legal).
        tile_rows = rows
    else:
        # Keep >= 2 grid steps whenever possible so the "parallel" axis can be
        # sharded across both TensorCores on megacore chips (v7x).
        half_rows = _round_up(pl.cdiv(rows, 2), base_rows)
        tile_rows = max(base_rows, min(tile_rows_target, half_rows))

    grid = (pl.cdiv(rows, tile_rows),)  # partial boundary block is masked

    out2d = pl.pallas_call(
        _gelu_tanh_kernel,
        out_shape=jax.ShapeDtypeStruct((rows, lane), x.dtype),
        grid=grid,
        in_specs=[pl.BlockSpec((tile_rows, lane), lambda i: (i, 0))],
        out_specs=pl.BlockSpec((tile_rows, lane), lambda i: (i, 0)),
        compiler_params=pltpu.CompilerParams(
            dimension_semantics=("parallel",),
            vmem_limit_bytes=32 * 1024 * 1024,
        ),
    )(x2d)

    out_flat = out2d.reshape(-1)
    if padded_n != n:
        out_flat = out_flat[:n]
    return out_flat.reshape(orig_shape)


def _reference_gelu(x):
    xf = x.astype(jnp.float32)
    y = 0.5 * xf * (1.0 + jnp.tanh(_K0 * (xf + 0.044715 * xf ** 3)))
    return y.astype(x.dtype)


if __name__ == "__main__":
    key = jax.random.PRNGKey(0)

    # Small NCHW input, as a conv-style activation would see.
    x = jax.random.normal(key, (2, 4, 16, 16), dtype=jnp.float32)
    y = gelu_activation(x)
    jax.block_until_ready(y)
    assert y.shape == x.shape and y.dtype == x.dtype
    assert jnp.allclose(y, _reference_gelu(x), atol=1e-5, rtol=1e-5)

    # Non-divisible shape: exercises the ragged (padded) fallback path.
    x2 = jax.random.normal(jax.random.PRNGKey(1), (3, 5, 17, 33), dtype=jnp.float32)
    y2 = gelu_activation(x2)
    jax.block_until_ready(y2)
    assert jnp.allclose(y2, _reference_gelu(x2), atol=1e-5, rtol=1e-5)

    # Larger divisible shape: exercises the pad-free multi-block (grid >= 2) path.
    x3 = jax.random.normal(jax.random.PRNGKey(2), (4, 8, 128, 128), dtype=jnp.float32)
    y3 = gelu_activation(x3)
    jax.block_until_ready(y3)
    assert jnp.allclose(y3, _reference_gelu(x3), atol=1e-5, rtol=1e-5)

    print("KERNEL_OK")
</pallas_src>

<mosaic_0001>
module attributes {stable_mosaic.version = 11 : i64} {
  func.func @_gelu_tanh_kernel(%arg0: i32, %arg1: memref<2x1024xf32, #tpu.memory_space<vmem>>, %arg2: memref<2x1024xf32, #tpu.memory_space<vmem>>) attributes {dimension_semantics = [#tpu.dimension_semantics<parallel>], iteration_bounds = array<i64: 1>, scalar_prefetch = 0 : i64, scratch_operands = 0 : i64, tpu.core_type = #tpu.core_type<tc>, window_params = [{transform_indices = @transform_0, window_bounds = array<i64: 2, 1024>}, {transform_indices = @transform_1, window_bounds = array<i64: 2, 1024>}]} {
    %c0 = arith.constant 0 : index
    %c0_0 = arith.constant 0 : index
    %0 = vector.load %arg1[%c0, %c0_0] : memref<2x1024xf32, #tpu.memory_space<vmem>>, vector<2x1024xf32>
    %1 = arith.mulf %0, %0 : vector<2x1024xf32>
    %cst = arith.constant 0.0356774069 : f32
    %2 = vector.broadcast %cst : f32 to vector<2x1024xf32>
    %3 = arith.mulf %2, %1 : vector<2x1024xf32>
    %cst_1 = arith.constant 0.797884583 : f32
    %4 = vector.broadcast %cst_1 : f32 to vector<2x1024xf32>
    %5 = arith.addf %4, %3 : vector<2x1024xf32>
    %6 = arith.mulf %0, %5 : vector<2x1024xf32>
    %7 = math.tanh %6 : vector<2x1024xf32>
    %cst_2 = arith.constant 5.000000e-01 : f32
    %8 = vector.broadcast %cst_2 : f32 to vector<2x1024xf32>
    %9 = arith.mulf %8, %7 : vector<2x1024xf32>
    %cst_3 = arith.constant 5.000000e-01 : f32
    %10 = vector.broadcast %cst_3 : f32 to vector<2x1024xf32>
    %11 = arith.addf %10, %9 : vector<2x1024xf32>
    %12 = arith.mulf %0, %11 : vector<2x1024xf32>
    %c0_4 = arith.constant 0 : index
    %c0_5 = arith.constant 0 : index
    %13 = vector.load %arg2[%c0_4, %c0_5] : memref<2x1024xf32, #tpu.memory_space<vmem>>, vector<2x1024xf32>
    tpu.vector_store %arg2[%c0_4, %c0_5], %12 {strides = array<i32>} : memref<2x1024xf32, #tpu.memory_space<vmem>>, vector<2x1024xf32>,
    return
  }
  func.func @transform_0(%arg0: i32) -> (i32, i32) {
    %c0_i32 = arith.constant 0 : i32
    %c0_i32_0 = arith.constant 0 : i32
    return %arg0, %c0_i32 : i32, i32
  }
  func.func @transform_1(%arg0: i32) -> (i32, i32) {
    %c0_i32 = arith.constant 0 : i32
    %c0_i32_0 = arith.constant 0 : i32
    return %arg0, %c0_i32 : i32, i32
  }
}

</mosaic_0001>

<bundles_post_ra>
// kernel: tpu_custom_call.1
= control target key start
LH: loop header
LB: loop body
LE: loop exit
PB: predicated region body
PF: predicated region fallthrough
CT: control target
= control target key end

     0   :  { %6 = vsyncpa [#allocation3], 0  ;;  %s136_s0 = inlined_call_operand.hbm [shape: f32[2,1024], index: 0, kind: input, shape index: {}]   ;;  %s137_s1 = inlined_call_operand.hbm [shape: f32[2,1024], index: 1, kind: output, shape index: {}]  }
   0x1   :  { %7 = vsyncpa [#allocation4], 0  ;;  %s13_s8 = sshll.u32 %s136_s0, 4  ;;  %s118_s9 = smov [#allocation2]   ;;  %s14_s8 = int_to_ptr.hbm [resolvable:$true] %s13_s8 }
   0x2   :  { %s15_s10 = sshll.u32 %s118_s9, 4  ;;  %s16_s10 = int_to_ptr.vmem [resolvable:$true] %s15_s10 }
   0x3   :  { %18 = dma.hbm_to_vmem [thread:$0]  %s14_s8, 256, %s16_s10, [#allocation3]  }
   0x4   :  { %114 = dma.done.wait [#allocation3], 256  }
   0x5   :  { %115 = vsyncadd [#allocation3], 4294967040  ;;  %v23_v0 = vld [vmem:[#allocation2] sm:$0xff]  ;;  %v24_v1 = vld [vmem:[#allocation2 + $0x8] sm:$0xff]  ;;  %s119_s0 = smov [#allocation5]   ;;  %s50_s14 = sshll.u32 %s137_s1, 4  ;;  %s51_s14 = int_to_ptr.hbm [resolvable:$true] %s50_s14 }
   0x6   :  { %v25_v2 = vmul.f32 %v23_v0, %v23_v0  ;;  %v26_v3 = vmul.f32 %v24_v1, %v24_v1  ;;  %s48_s11 = sshll.u32 %s119_s0, 4  ;;  %s49_s11 = int_to_ptr.vmem [resolvable:$true] %s48_s11 }
   0x8   :  { %v27_v4 = vmul.f32 0.035677407, %v25_v2  ;;  %v28_v5 = vmul.f32 0.035677407, %v26_v3 }
   0xa   :  { %v29_v6 = vadd.f32 0.7978846, %v27_v4  ;;  %v30_v7 = vadd.f32 0.7978846, %v28_v5 }
   0xc   :  { %v31_v8 = vmul.f32 %v29_v6, %v23_v0  ;;  %v32_v9 = vmul.f32 %v30_v7, %v24_v1 }
   0xe   :  { %62 = vtanh.f32 %v31_v8 }
   0xf   :  { %64 = vtanh.f32 %v32_v9 }
  0x14   :  { %v63_v10 = vpop.eup %62 }
  0x15   :  { %v65_v11 = vpop.eup %64  ;;  %v35_v12 = vmul.f32 0.5, %v63_v10 }
  0x16   :  { %v36_v13 = vmul.f32 0.5, %v65_v11 }
  0x17   :  { %v37_v14 = vadd.f32 0.5, %v35_v12 }
  0x18   :  { %v38_v15 = vadd.f32 0.5, %v36_v13 }
  0x19   :  { %v39_v16 = vmul.f32 %v37_v14, %v23_v0 }
  0x1a   :  { %v40_v17 = vmul.f32 %v38_v15, %v24_v1 }
  0x1b   :  { %41 = vst [vmem:[#allocation5] sm:$0xff] %v39_v16 }
  0x1c   :  { %42 = vst [vmem:[#allocation5 + $0x8] sm:$0xff] %v40_v17 }
  0x1d   :  { %53 = dma.vmem_to_hbm [thread:$0]  %s49_s11, 256, %s51_s14, [#allocation4]  }
  0x1e   :  { %116 = dma.done.wait [#allocation4], 256  }
  0x1f   :  { %117 = vsyncadd [#allocation4], 4294967040 }
  0x20   :  { %58 = vsyncpa [#allocation3], 1 }
  0x21   :  { %59 = vsyncpa [#allocation4], 1 }

</bundles_post_ra>
